<compile_context>
chip_gen: v7x
topology: tpu7x:2x2x1
jax: 0.10.0
libtpu: 0.0.40
codegen_flags: <defaults>
</compile_context>

<pallas_src>
import jax
import jax.numpy as jnp
from jax.experimental import pallas as pl
from jax.experimental.pallas import tpu as pltpu


def _round_up(a: int, m: int) -> int:
    return (a + m - 1) // m * m


def anf_kernel(cw_ref, x_ref, w1_ref, b1_ref, w2_ref, b2_ref, o_ref):
    # cw_ref: SMEM (C,)  f32 conv weights
    # x_ref:  (TB, C*Lp) bf16  -- channel c occupies lanes [c*Lp, (c+1)*Lp)
    # w1_ref: (Lp, Lp)   bf16     b1_ref: (1, Lp) f32 (conv bias folded in)
    # w2_ref: (Lp, Op)   bf16     b2_ref: (1, Op) f32
    # o_ref:  (TB, Op)   f32
    C = cw_ref.shape[0]
    Lp = w1_ref.shape[0]

    # 1x1 conv with out_channels=1: weighted channel sum on the VPU.
    # Static, 128-aligned lane slices; accumulate in f32.
    h = cw_ref[0] * x_ref[:, 0:Lp].astype(jnp.float32)
    for c in range(1, C):
        h = h + cw_ref[c] * x_ref[:, c * Lp:(c + 1) * Lp].astype(jnp.float32)

    # fc1 + ReLU: bf16 MXU matmul, f32 accumulation / bias.
    h1 = jnp.dot(h.astype(jnp.bfloat16), w1_ref[...],
                 preferred_element_type=jnp.float32)
    h1 = jnp.maximum(h1 + b1_ref[...], 0.0)

    # fc2: bf16 MXU matmul, f32 accumulation / bias.
    out = jnp.dot(h1.astype(jnp.bfloat16), w2_ref[...],
                  preferred_element_type=jnp.float32) + b2_ref[...]
    o_ref[...] = out.astype(o_ref.dtype)


def prepare_params(params, input_size, input_channels, output_size):
    """One-time weight preparation (hoisted out of the per-call path)."""
    L, C, O = input_size, input_channels, output_size
    Lp, Op = _round_up(L, 128), _round_up(O, 128)

    conv_w = params["conv_w"].reshape(C).astype(jnp.float32)     # (C,)
    conv_b = params["conv_b"].reshape(())                        # scalar
    w1t = params["fc1_w"].T.astype(jnp.float32)                  # (L, L) in,out
    w2t = params["fc2_w"].T.astype(jnp.float32)                  # (L, O) in,out

    # Fold the conv bias into fc1's bias: (h + conv_b) @ W1^T + b1.
    b1f = params["fc1_b"] + conv_b * jnp.sum(w1t, axis=0)        # (L,)

    w1_p = jnp.zeros((Lp, Lp), jnp.bfloat16).at[:L, :L].set(w1t.astype(jnp.bfloat16))
    b1_p = jnp.zeros((1, Lp), jnp.float32).at[0, :L].set(b1f)
    w2_p = jnp.zeros((Lp, Op), jnp.bfloat16).at[:L, :O].set(w2t.astype(jnp.bfloat16))
    b2_p = jnp.zeros((1, Op), jnp.float32).at[0, :O].set(params["fc2_b"])

    return {"conv_w": conv_w, "w1": w1_p, "b1": b1_p, "w2": w2_p, "b2": b2_p,
            "dims": (L, C, O, Lp, Op)}


def _batch_tile(B: int) -> int:
    """Batch tile: multiple of 8 (128 when large), >= 2 grid steps when B allows."""
    B8 = _round_up(B, 8)
    if B8 < 16:
        return B8                           # tiny batch: single grid step
    if B8 < 256:
        return _round_up(-(-B8 // 2), 8)    # ~2 steps -> both TCs on v7x
    if B8 < 1024:
        return 128                          # MXU-friendly, >= 2 steps
    return 256                              # big batch: larger tiles, many steps


def anf_net_forward(x, prep):
    """x: (B, C, L) float32. prep: output of prepare_params (precomputed once)."""
    L, C, O, Lp, Op = prep["dims"]
    B = x.shape[0]

    TB = _batch_tile(B)
    B_pad = _round_up(_round_up(B, 8), TB)
    grid = (B_pad // TB,)

    # Pad/cast x -> (B_pad, C, Lp) bf16, flatten channels along lanes.
    x_p = jnp.zeros((B_pad, C, Lp), jnp.bfloat16)
    x_p = x_p.at[:B, :, :L].set(x.astype(jnp.bfloat16))
    x_p = x_p.reshape(B_pad, C * Lp)

    flops = 2 * B_pad * (C * Lp + Lp * Lp + Lp * Op)
    bytes_accessed = (2 * B_pad * C * Lp + 2 * (Lp * Lp + Lp * Op)
                      + 4 * (Lp + Op) + 4 * B_pad * Op + 4 * C)
    cost = pl.CostEstimate(flops=flops, transcendentals=0,
                           bytes_accessed=bytes_accessed)

    x_tile_bytes = TB * C * Lp * 2
    out_tile_bytes = TB * Op * 4
    weight_bytes = (Lp * Lp + Lp * Op) * 2 + (Lp + Op) * 4

    def run(single_buffer_weights: bool):
        n_wbuf = 1 if single_buffer_weights else 2
        vmem_limit = int(min(
            2 * (x_tile_bytes + out_tile_bytes) + n_wbuf * weight_bytes
            + (8 << 20),                    # headroom for compiler scratch
            56 << 20))                      # stay under v7x's 64 MiB VMEM

        res_kw = dict(pipeline_mode=pl.Buffered(1)) if single_buffer_weights else {}
        in_specs = [
            pl.BlockSpec(memory_space=pltpu.MemorySpace.SMEM),       # conv_w
            pl.BlockSpec((TB, C * Lp), lambda i: (i, 0)),            # x tile
            pl.BlockSpec((Lp, Lp), lambda i: (0, 0), **res_kw),      # W1 (resident)
            pl.BlockSpec((1, Lp), lambda i: (0, 0), **res_kw),       # b1 (resident)
            pl.BlockSpec((Lp, Op), lambda i: (0, 0), **res_kw),      # W2 (resident)
            pl.BlockSpec((1, Op), lambda i: (0, 0), **res_kw),       # b2 (resident)
        ]
        return pl.pallas_call(
            anf_kernel,
            out_shape=jax.ShapeDtypeStruct((B_pad, Op), jnp.float32),
            grid_spec=pltpu.PrefetchScalarGridSpec(
                num_scalar_prefetch=0,
                grid=grid,
                in_specs=in_specs,
                out_specs=pl.BlockSpec((TB, Op), lambda i: (i, 0)),
            ),
            compiler_params=pltpu.CompilerParams(
                dimension_semantics=("parallel",),
                vmem_limit_bytes=vmem_limit,
            ),
            cost_estimate=cost,
        )(prep["conv_w"], x_p, prep["w1"], prep["b1"], prep["w2"], prep["b2"])

    try:
        out = run(True)
    except Exception:
        # Fallback for JAX versions without BlockSpec(pipeline_mode=...).
        out = run(False)

    return out[:B, :O]


def init_params(key, input_size, input_channels, output_size):
    """Deterministic synthetic parameters with the same shapes as ANF_net.__init__."""
    k = jax.random.split(key, 6)
    scale = 0.1
    return {
        "conv_w": scale * jax.random.normal(k[0], (1, input_channels, 1), jnp.float32),
        "conv_b": scale * jax.random.normal(k[1], (1,), jnp.float32),
        "fc1_w": scale * jax.random.normal(k[2], (input_size, input_size), jnp.float32),
        "fc1_b": scale * jax.random.normal(k[3], (input_size,), jnp.float32),
        "fc2_w": scale * jax.random.normal(k[4], (output_size, input_size), jnp.float32),
        "fc2_b": scale * jax.random.normal(k[5], (output_size,), jnp.float32),
    }


def anf_net_ref(x, params):
    """Pure-JAX f32 reference matching the PyTorch forward."""
    B, C, L = x.shape
    h = jnp.einsum("bcl,c->bl", x, params["conv_w"].reshape(C)) + params["conv_b"][0]
    h1 = jnp.maximum(h @ params["fc1_w"].T + params["fc1_b"], 0.0)
    return h1 @ params["fc2_w"].T + params["fc2_b"]


if __name__ == "__main__":
    # Small shapes consistent with the module: B=2 samples, C=4 channels,
    # L=input_size=16, output_size=8.
    B, C, L, O = 2, 4, 16, 8
    key = jax.random.PRNGKey(0)
    kx, kp = jax.random.split(key)
    x = jax.random.normal(kx, (B, C, L), jnp.float32)
    params = init_params(kp, input_size=L, input_channels=C, output_size=O)

    prep = prepare_params(params, input_size=L, input_channels=C, output_size=O)
    out = anf_net_forward(x, prep)
    out = jax.block_until_ready(out)

    ref = anf_net_ref(x, params)
    assert out.shape == (B, O)
    max_err = float(jnp.max(jnp.abs(out - ref)))
    # bf16 matmul inputs with f32 accumulation -> loosened tolerance vs f32 ref.
    assert jnp.allclose(out, ref, atol=3e-2, rtol=3e-2), f"mismatch vs reference: {max_err}"
    print("KERNEL_OK")
</pallas_src>

<mosaic_0001>
module attributes {stable_mosaic.version = 11 : i64} {
  func.func @anf_kernel(%arg0: i32, %arg1: memref<4xf32, #tpu.memory_space<smem>>, %arg2: memref<8x512xbf16, #tpu.memory_space<vmem>>, %arg3: memref<128x128xbf16, #tpu.memory_space<vmem>>, %arg4: memref<1x128xf32, #tpu.memory_space<vmem>>, %arg5: memref<128x128xbf16, #tpu.memory_space<vmem>>, %arg6: memref<1x128xf32, #tpu.memory_space<vmem>>, %arg7: memref<8x128xf32, #tpu.memory_space<vmem>>) attributes {dimension_semantics = [#tpu.dimension_semantics<parallel>], iteration_bounds = array<i64: 1>, scalar_prefetch = 0 : i64, scratch_operands = 0 : i64, tpu.core_type = #tpu.core_type<tc>, window_params = [{transform_indices = @transform_0, window_bounds = array<i64: 4>}, {transform_indices = @transform_1, window_bounds = array<i64: 8, 512>}, {pipeline_mode = #tpu.pipeline_mode<synchronous>, transform_indices = @transform_2, window_bounds = array<i64: 128, 128>}, {pipeline_mode = #tpu.pipeline_mode<synchronous>, transform_indices = @transform_3, window_bounds = array<i64: 1, 128>}, {pipeline_mode = #tpu.pipeline_mode<synchronous>, transform_indices = @transform_4, window_bounds = array<i64: 128, 128>}, {pipeline_mode = #tpu.pipeline_mode<synchronous>, transform_indices = @transform_5, window_bounds = array<i64: 1, 128>}, {transform_indices = @transform_6, window_bounds = array<i64: 8, 128>}]} {
    %c0 = arith.constant 0 : index
    %0 = memref.load %arg1[%c0] : memref<4xf32, #tpu.memory_space<smem>>
    %c0_0 = arith.constant 0 : index
    %c0_1 = arith.constant 0 : index
    %1 = vector.load %arg2[%c0_0, %c0_1] : memref<8x512xbf16, #tpu.memory_space<vmem>>, vector<8x128xbf16>
    %2 = arith.extf %1 : vector<8x128xbf16> to vector<8x128xf32>
    %3 = vector.broadcast %0 : f32 to vector<8x128xf32>
    %4 = arith.mulf %3, %2 : vector<8x128xf32>
    %c1 = arith.constant 1 : index
    %5 = memref.load %arg1[%c1] : memref<4xf32, #tpu.memory_space<smem>>
    %c0_2 = arith.constant 0 : index
    %c128 = arith.constant 128 : index
    %6 = vector.load %arg2[%c0_2, %c128] : memref<8x512xbf16, #tpu.memory_space<vmem>>, vector<8x128xbf16>
    %7 = arith.extf %6 : vector<8x128xbf16> to vector<8x128xf32>
    %8 = vector.broadcast %5 : f32 to vector<8x128xf32>
    %9 = arith.mulf %8, %7 : vector<8x128xf32>
    %10 = arith.addf %4, %9 : vector<8x128xf32>
    %c2 = arith.constant 2 : index
    %11 = memref.load %arg1[%c2] : memref<4xf32, #tpu.memory_space<smem>>
    %c0_3 = arith.constant 0 : index
    %c256 = arith.constant 256 : index
    %12 = vector.load %arg2[%c0_3, %c256] : memref<8x512xbf16, #tpu.memory_space<vmem>>, vector<8x128xbf16>
    %13 = arith.extf %12 : vector<8x128xbf16> to vector<8x128xf32>
    %14 = vector.broadcast %11 : f32 to vector<8x128xf32>
    %15 = arith.mulf %14, %13 : vector<8x128xf32>
    %16 = arith.addf %10, %15 : vector<8x128xf32>
    %c3 = arith.constant 3 : index
    %17 = memref.load %arg1[%c3] : memref<4xf32, #tpu.memory_space<smem>>
    %c0_4 = arith.constant 0 : index
    %c384 = arith.constant 384 : index
    %18 = vector.load %arg2[%c0_4, %c384] : memref<8x512xbf16, #tpu.memory_space<vmem>>, vector<8x128xbf16>
    %19 = arith.extf %18 : vector<8x128xbf16> to vector<8x128xf32>
    %20 = vector.broadcast %17 : f32 to vector<8x128xf32>
    %21 = arith.mulf %20, %19 : vector<8x128xf32>
    %22 = arith.addf %16, %21 : vector<8x128xf32>
    %23 = arith.truncf %22 : vector<8x128xf32> to vector<8x128xbf16>
    %c0_5 = arith.constant 0 : index
    %c0_6 = arith.constant 0 : index
    %24 = vector.load %arg3[%c0_5, %c0_6] : memref<128x128xbf16, #tpu.memory_space<vmem>>, vector<128x128xbf16>
    %cst = arith.constant dense<0.000000e+00> : vector<8x128xf32>
    %25 = tpu.matmul %23, %24, %cst {dimension_numbers = #tpu.dot_dimension_numbers<[1], [0], [0], [1], [0, 0, 1, 1], [], []>} : vector<8x128xbf16>, vector<128x128xbf16>, vector<8x128xf32> -> vector<8x128xf32>
    %c0_7 = arith.constant 0 : index
    %c0_8 = arith.constant 0 : index
    %26 = vector.load %arg4[%c0_7, %c0_8] : memref<1x128xf32, #tpu.memory_space<vmem>>, vector<1x128xf32>
    %27 = vector.broadcast %26 : vector<1x128xf32> to vector<8x128xf32>
    %28 = arith.addf %25, %27 : vector<8x128xf32>
    %cst_9 = arith.constant 0.000000e+00 : f32
    %29 = vector.broadcast %cst_9 : f32 to vector<8x128xf32>
    %30 = arith.maximumf %28, %29 : vector<8x128xf32>
    %31 = arith.truncf %30 : vector<8x128xf32> to vector<8x128xbf16>
    %c0_10 = arith.constant 0 : index
    %c0_11 = arith.constant 0 : index
    %32 = vector.load %arg5[%c0_10, %c0_11] : memref<128x128xbf16, #tpu.memory_space<vmem>>, vector<128x128xbf16>
    %cst_12 = arith.constant dense<0.000000e+00> : vector<8x128xf32>
    %33 = tpu.matmul %31, %32, %cst_12 {dimension_numbers = #tpu.dot_dimension_numbers<[1], [0], [0], [1], [0, 0, 1, 1], [], []>} : vector<8x128xbf16>, vector<128x128xbf16>, vector<8x128xf32> -> vector<8x128xf32>
    %c0_13 = arith.constant 0 : index
    %c0_14 = arith.constant 0 : index
    %34 = vector.load %arg6[%c0_13, %c0_14] : memref<1x128xf32, #tpu.memory_space<vmem>>, vector<1x128xf32>
    %35 = vector.broadcast %34 : vector<1x128xf32> to vector<8x128xf32>
    %36 = arith.addf %33, %35 : vector<8x128xf32>
    %c0_15 = arith.constant 0 : index
    %c0_16 = arith.constant 0 : index
    %37 = vector.load %arg7[%c0_15, %c0_16] : memref<8x128xf32, #tpu.memory_space<vmem>>, vector<8x128xf32>
    tpu.vector_store %arg7[%c0_15, %c0_16], %36 {strides = array<i32>} : memref<8x128xf32, #tpu.memory_space<vmem>>, vector<8x128xf32>,
    return
  }
  func.func @transform_0(%arg0: i32) -> i32 {
    %c0_i32 = arith.constant 0 : i32
    %c0_i32_0 = arith.constant 0 : i32
    return %c0_i32 : i32
  }
  func.func @transform_1(%arg0: i32) -> (i32, i32) {
    %c0_i32 = arith.constant 0 : i32
    %c0_i32_0 = arith.constant 0 : i32
    return %arg0, %c0_i32 : i32, i32
  }
  func.func @transform_2(%arg0: i32) -> (i32, i32) {
    %c0_i32 = arith.constant 0 : i32
    %c0_i32_0 = arith.constant 0 : i32
    %c0_i32_1 = arith.constant 0 : i32
    return %c0_i32, %c0_i32_0 : i32, i32
  }
  func.func @transform_3(%arg0: i32) -> (i32, i32) {
    %c0_i32 = arith.constant 0 : i32
    %c0_i32_0 = arith.constant 0 : i32
    %c0_i32_1 = arith.constant 0 : i32
    return %c0_i32, %c0_i32_0 : i32, i32
  }
  func.func @transform_4(%arg0: i32) -> (i32, i32) {
    %c0_i32 = arith.constant 0 : i32
    %c0_i32_0 = arith.constant 0 : i32
    %c0_i32_1 = arith.constant 0 : i32
    return %c0_i32, %c0_i32_0 : i32, i32
  }
  func.func @transform_5(%arg0: i32) -> (i32, i32) {
    %c0_i32 = arith.constant 0 : i32
    %c0_i32_0 = arith.constant 0 : i32
    %c0_i32_1 = arith.constant 0 : i32
    return %c0_i32, %c0_i32_0 : i32, i32
  }
  func.func @transform_6(%arg0: i32) -> (i32, i32) {
    %c0_i32 = arith.constant 0 : i32
    %c0_i32_0 = arith.constant 0 : i32
    return %arg0, %c0_i32 : i32, i32
  }
}

module attributes {stable_mosaic.version = 11 : i64} {
  func.func @anf_kernel(%arg0: i32, %arg1: memref<4xf32, #tpu.memory_space<smem>>, %arg2: memref<8x512xbf16, #tpu.memory_space<vmem>>, %arg3: memref<128x128xbf16, #tpu.memory_space<vmem>>, %arg4: memref<1x128xf32, #tpu.memory_space<vmem>>, %arg5: memref<128x128xbf16, #tpu.memory_space<vmem>>, %arg6: memref<1x128xf32, #tpu.memory_space<vmem>>, %arg7: memref<8x128xf32, #tpu.memory_space<vmem>>) attributes {dimension_semantics = [#tpu.dimension_semantics<parallel>], iteration_bounds = array<i64: 1>, scalar_prefetch = 0 : i64, scratch_operands = 0 : i64, tpu.core_type = #tpu.core_type<tc>, window_params = [{transform_indices = @transform_0, window_bounds = array<i64: 4>}, {transform_indices = @transform_1, window_bounds = array<i64: 8, 512>}, {pipeline_mode = #tpu.pipeline_mode<synchronous>, transform_indices = @transform_2, window_bounds = array<i64: 128, 128>}, {pipeline_mode = #tpu.pipeline_mode<synchronous>, transform_indices = @transform_3, window_bounds = array<i64: 1, 128>}, {pipeline_mode = #tpu.pipeline_mode<synchronous>, transform_indices = @transform_4, window_bounds = array<i64: 128, 128>}, {pipeline_mode = #tpu.pipeline_mode<synchronous>, transform_indices = @transform_5, window_bounds = array<i64: 1, 128>}, {transform_indices = @transform_6, window_bounds = array<i64: 8, 128>}]} {
    %c0 = arith.constant 0 : index
    %0 = memref.load %arg1[%c0] : memref<4xf32, #tpu.memory_space<smem>>
    %c0_0 = arith.constant 0 : index
    %c0_1 = arith.constant 0 : index
    %1 = vector.load %arg2[%c0_0, %c0_1] : memref<8x512xbf16, #tpu.memory_space<vmem>>, vector<8x128xbf16>
    %2 = arith.extf %1 : vector<8x128xbf16> to vector<8x128xf32>
    %3 = vector.broadcast %0 : f32 to vector<8x128xf32>
    %4 = arith.mulf %3, %2 : vector<8x128xf32>
    %c1 = arith.constant 1 : index
    %5 = memref.load %arg1[%c1] : memref<4xf32, #tpu.memory_space<smem>>
    %c0_2 = arith.constant 0 : index
    %c128 = arith.constant 128 : index
    %6 = vector.load %arg2[%c0_2, %c128] : memref<8x512xbf16, #tpu.memory_space<vmem>>, vector<8x128xbf16>
    %7 = arith.extf %6 : vector<8x128xbf16> to vector<8x128xf32>
    %8 = vector.broadcast %5 : f32 to vector<8x128xf32>
    %9 = arith.mulf %8, %7 : vector<8x128xf32>
    %10 = arith.addf %4, %9 : vector<8x128xf32>
    %c2 = arith.constant 2 : index
    %11 = memref.load %arg1[%c2] : memref<4xf32, #tpu.memory_space<smem>>
    %c0_3 = arith.constant 0 : index
    %c256 = arith.constant 256 : index
    %12 = vector.load %arg2[%c0_3, %c256] : memref<8x512xbf16, #tpu.memory_space<vmem>>, vector<8x128xbf16>
    %13 = arith.extf %12 : vector<8x128xbf16> to vector<8x128xf32>
    %14 = vector.broadcast %11 : f32 to vector<8x128xf32>
    %15 = arith.mulf %14, %13 : vector<8x128xf32>
    %16 = arith.addf %10, %15 : vector<8x128xf32>
    %c3 = arith.constant 3 : index
    %17 = memref.load %arg1[%c3] : memref<4xf32, #tpu.memory_space<smem>>
    %c0_4 = arith.constant 0 : index
    %c384 = arith.constant 384 : index
    %18 = vector.load %arg2[%c0_4, %c384] : memref<8x512xbf16, #tpu.memory_space<vmem>>, vector<8x128xbf16>
    %19 = arith.extf %18 : vector<8x128xbf16> to vector<8x128xf32>
    %20 = vector.broadcast %17 : f32 to vector<8x128xf32>
    %21 = arith.mulf %20, %19 : vector<8x128xf32>
    %22 = arith.addf %16, %21 : vector<8x128xf32>
    %23 = arith.truncf %22 : vector<8x128xf32> to vector<8x128xbf16>
    %c0_5 = arith.constant 0 : index
    %c0_6 = arith.constant 0 : index
    %24 = vector.load %arg3[%c0_5, %c0_6] : memref<128x128xbf16, #tpu.memory_space<vmem>>, vector<128x128xbf16>
    %cst = arith.constant dense<0.000000e+00> : vector<8x128xf32>
    %25 = tpu.matmul %23, %24, %cst {dimension_numbers = #tpu.dot_dimension_numbers<[1], [0], [0], [1], [0, 0, 1, 1], [], []>} : vector<8x128xbf16>, vector<128x128xbf16>, vector<8x128xf32> -> vector<8x128xf32>
    %c0_7 = arith.constant 0 : index
    %c0_8 = arith.constant 0 : index
    %26 = vector.load %arg4[%c0_7, %c0_8] : memref<1x128xf32, #tpu.memory_space<vmem>>, vector<1x128xf32>
    %27 = vector.broadcast %26 : vector<1x128xf32> to vector<8x128xf32>
    %28 = arith.addf %25, %27 : vector<8x128xf32>
    %cst_9 = arith.constant 0.000000e+00 : f32
    %29 = vector.broadcast %cst_9 : f32 to vector<8x128xf32>
    %30 = arith.maximumf %28, %29 : vector<8x128xf32>
    %31 = arith.truncf %30 : vector<8x128xf32> to vector<8x128xbf16>
    %c0_10 = arith.constant 0 : index
    %c0_11 = arith.constant 0 : index
    %32 = vector.load %arg5[%c0_10, %c0_11] : memref<128x128xbf16, #tpu.memory_space<vmem>>, vector<128x128xbf16>
    %cst_12 = arith.constant dense<0.000000e+00> : vector<8x128xf32>
    %33 = tpu.matmul %31, %32, %cst_12 {dimension_numbers = #tpu.dot_dimension_numbers<[1], [0], [0], [1], [0, 0, 1, 1], [], []>} : vector<8x128xbf16>, vector<128x128xbf16>, vector<8x128xf32> -> vector<8x128xf32>
    %c0_13 = arith.constant 0 : index
    %c0_14 = arith.constant 0 : index
    %34 = vector.load %arg6[%c0_13, %c0_14] : memref<1x128xf32, #tpu.memory_space<vmem>>, vector<1x128xf32>
    %35 = vector.broadcast %34 : vector<1x128xf32> to vector<8x128xf32>
    %36 = arith.addf %33, %35 : vector<8x128xf32>
    %c0_15 = arith.constant 0 : index
    %c0_16 = arith.constant 0 : index
    %37 = vector.load %arg7[%c0_15, %c0_16] : memref<8x128xf32, #tpu.memory_space<vmem>>, vector<8x128xf32>
    tpu.vector_store %arg7[%c0_15, %c0_16], %36 {strides = array<i32>} : memref<8x128xf32, #tpu.memory_space<vmem>>, vector<8x128xf32>,
    return
  }
  func.func @transform_0(%arg0: i32) -> i32 {
    %c0_i32 = arith.constant 0 : i32
    %c0_i32_0 = arith.constant 0 : i32
    return %c0_i32 : i32
  }
  func.func @transform_1(%arg0: i32) -> (i32, i32) {
    %c0_i32 = arith.constant 0 : i32
    %c0_i32_0 = arith.constant 0 : i32
    return %arg0, %c0_i32 : i32, i32
  }
  func.func @transform_2(%arg0: i32) -> (i32, i32) {
    %c0_i32 = arith.constant 0 : i32
    %c0_i32_0 = arith.constant 0 : i32
    %c0_i32_1 = arith.constant 0 : i32
    return %c0_i32, %c0_i32_0 : i32, i32
  }
  func.func @transform_3(%arg0: i32) -> (i32, i32) {
    %c0_i32 = arith.constant 0 : i32
    %c0_i32_0 = arith.constant 0 : i32
    %c0_i32_1 = arith.constant 0 : i32
    return %c0_i32, %c0_i32_0 : i32, i32
  }
  func.func @transform_4(%arg0: i32) -> (i32, i32) {
    %c0_i32 = arith.constant 0 : i32
    %c0_i32_0 = arith.constant 0 : i32
    %c0_i32_1 = arith.constant 0 : i32
    return %c0_i32, %c0_i32_0 : i32, i32
  }
  func.func @transform_5(%arg0: i32) -> (i32, i32) {
    %c0_i32 = arith.constant 0 : i32
    %c0_i32_0 = arith.constant 0 : i32
    %c0_i32_1 = arith.constant 0 : i32
    return %c0_i32, %c0_i32_0 : i32, i32
  }
  func.func @transform_6(%arg0: i32) -> (i32, i32) {
    %c0_i32 = arith.constant 0 : i32
    %c0_i32_0 = arith.constant 0 : i32
    return %arg0, %c0_i32 : i32, i32
  }
}

</mosaic_0001>

<bundles_post_ra>
// kernel: tpu_custom_call.1
= control target key start
LH: loop header
LB: loop body
LE: loop exit
PB: predicated region body
PF: predicated region fallthrough
CT: control target
= control target key end

     0   :  { %11 = vsyncpa [#allocation5], 0  ;;  %s695_s0 = inlined_call_operand.hbm [shape: f32[4], index: 0, kind: input, shape index: {}]   ;;  %s696_s1 = inlined_call_operand.hbm [shape: bf16[8,512], index: 1, kind: input, shape index: {}]   ;;  %s697_s2 = inlined_call_operand.hbm [shape: bf16[128,128], index: 2, kind: input, shape index: {}]   ;;  %s698_s3 = inlined_call_operand.vmem [shape: f32[1,128], index: 3, kind: input, shape index: {}]   ;;  %s699_s4 = inlined_call_operand.hbm [shape: bf16[128,128], index: 4, kind: input, shape index: {}]   ;;  %s700_s5 = inlined_call_operand.vmem [shape: f32[1,128], index: 5, kind: input, shape index: {}]   ;;  %s701_s6 = inlined_call_operand.hbm [shape: f32[8,128], index: 6, kind: output, shape index: {}]  }
   0x1   :  { %12 = vsyncpa [#allocation3], 0 }
   0x2   :  { %13 = vsyncpa [#allocation8], 0 }
   0x3   :  { %14 = vsyncpa [#allocation4], 0  ;;  %s551_s21 = smov [#allocation7]   ;;  %s445_s25 = scalar_lea.hbm %s697_s2, 1024 }
   0x4   :  { %s38_s22 = sshll.u32 %s551_s21, 4  ;;  %p446_p0 = scmp.ne.s32.totalorder %s697_s2, %s445_s25  ;;  %s39_s22 = int_to_ptr.vmem [resolvable:$true] %s38_s22 }
   0x5   :  { %p449_p1 = scmp.lt.u32.totalorder %s445_s25, %s697_s2 }
   0x7   :  { %p451_p2 = pnand %p449_p1, %p446_p0 }
   0x9   :  { %454 = shalt.err (!%p451_p2)
}
   0xa   :  { %s455_s30 = scalar_lea.vmem %s39_s22, 1024  ;;  %p460_p4 = scmp.lt.s32.totalorder %s39_s22, %s39_s22 }
   0xb   :  { %p456_p3 = scmp.ne.s32.totalorder %s39_s22, %s455_s30  ;;  %p461_p5 = scmp.lt.s32.totalorder %s455_s30, %s455_s30 }
   0xd   :  { %p462_p6 = por %p461_p5, %p460_p4 }
   0xf   :  { %p463_p7 = pnand %p462_p6, %p456_p3 }
  0x11   :  { %466 = shalt.err (!%p463_p7)
}
  0x12   :  { %s552_s7 = smov 64   ;;  %s553_s8 = smov 4  }
  0x13   :  { %44 = dma.hbm_to_vmem [thread:$0]  %s697_s2, 1024, %s39_s22, [#allocation8], %s552_s7, %s552_s7, %s553_s8  }
  0x14   :  { %s467_s13 = scalar_lea.hbm %s695_s0, 16 }
  0x15   :  { %p468_p8 = scmp.ne.s32.totalorder %s695_s0, %s467_s13  ;;  %p471_p9 = scmp.lt.u32.totalorder %s467_s13, %s695_s0 }
  0x17   :  { %p473_p10 = pnand %p471_p9, %p468_p8 }
  0x19   :  { %476 = shalt.err (!%p473_p10)
}
  0x1a   :  { %s554_s18 = smov [#allocation2]   ;;  %s555_s2 = smov [#allocation6]  }
  0x1b   :  { %22 = dma.hbm_to_smem %s695_s0, 16, %s554_s18, [#allocation5]  }
  0x1c   :  { %s29_s21 = sshll.u32 %s555_s2, 4  ;;  %s556_s22 = smov [#allocation9]   ;;  %s30_s21 = int_to_ptr.vmem [resolvable:$true] %s29_s21 }
  0x1d   :  { %s52_s23 = sshll.u32 %s556_s22, 4  ;;  %s477_s26 = scalar_lea.hbm %s696_s1, 256  ;;  %s622_s23 = int_to_ptr.vmem [resolvable:$true] %s52_s23 }
  0x1e   :  { %p478_p11 = scmp.ne.s32.totalorder %s696_s1, %s477_s26  ;;  %p481_p12 = scmp.lt.u32.totalorder %s477_s26, %s696_s1 }
  0x20   :  { %p483_p13 = pnand %p481_p12, %p478_p11 }
  0x22   :  { %486 = shalt.err (!%p483_p13)
}
  0x23   :  { %s487_s0 = scalar_lea.vmem %s30_s21, 256  ;;  %p492_p1 = scmp.lt.s32.totalorder %s30_s21, %s30_s21 }
  0x24   :  { %p488_p0 = scmp.ne.s32.totalorder %s30_s21, %s487_s0  ;;  %p493_p2 = scmp.lt.s32.totalorder %s487_s0, %s487_s0 }
  0x26   :  { %p494_p3 = por %p493_p2, %p492_p1 }
  0x28   :  { %p495_p4 = pnand %p494_p3, %p488_p0 }
  0x2a   :  { %498 = shalt.err (!%p495_p4)
}
  0x2b   :  { %32 = dma.hbm_to_vmem [thread:$0]  %s696_s1, 256, %s30_s21, [#allocation3]  }
  0x2c   :  { %s499_s13 = scalar_lea.hbm %s699_s4, 1024 }
  0x2d   :  { %p500_p5 = scmp.ne.s32.totalorder %s699_s4, %s499_s13  ;;  %p503_p6 = scmp.lt.u32.totalorder %s499_s13, %s699_s4 }
  0x2f   :  { %p505_p7 = pnand %p503_p6, %p500_p5 }
  0x31   :  { %508 = shalt.err (!%p505_p7)
}
  0x32   :  { %s509_s18 = scalar_lea.vmem %s622_s23, 1024  ;;  %p514_p9 = scmp.lt.s32.totalorder %s622_s23, %s622_s23 }
  0x33   :  { %p510_p8 = scmp.ne.s32.totalorder %s622_s23, %s509_s18  ;;  %p515_p10 = scmp.lt.s32.totalorder %s509_s18, %s509_s18 }
  0x35   :  { %p516_p11 = por %p515_p10, %p514_p9 }
  0x37   :  { %p517_p12 = pnand %p516_p11, %p510_p8 }
  0x39   :  { %520 = shalt.err (!%p517_p12)
}
  0x3a   :  { %58 = dma.hbm_to_vmem [thread:$0]  %s699_s4, 1024, %s622_s23, [#allocation8], %s552_s7, %s552_s7, %s553_s8  }
  0x3b   :  { %543 = dma.done.wait [#allocation5], 16  }
  0x3c   :  { %544 = vsyncadd [#allocation5], 4294967280 }
  0x3d   :  { %545 = dma.done.wait [#allocation3], 256  }
  0x3e   :  { %546 = vsyncadd [#allocation3], 4294967040 }
  0x3f   :  { %547 = dma.done.wait [#allocation8], 2048  }
  0x40   :  { %548 = vsyncadd [#allocation8], 4294965248 }
  0x41   :  { %73 = sfence }
  0x42   :  { %v429_v0 = vld [vmem:[#allocation7] sm:$0xff]   ;;  %v557_v1 = vmov 0.0   ;;  %v430_v2 = vld [vmem:[#allocation7 + $0x8] sm:$0xff]   ;;  %vm558_vm0 = vmmov 0   ;;  %v431_v3 = vld [vmem:[#allocation7 + $0x10] sm:$0xff]   ;;  %s75_s4 = sld [smem:[#allocation2]] }
  0x43   :  { %380 = vmatprep.subr.bf16.mxu0 %v557_v1  ;;  %400 = vmatprep.subr.bf16.mxu1 %v557_v1  ;;  %v432_v4 = vld [vmem:[#allocation7 + $0x18] sm:$0xff]   ;;  %v76_v5 = vld [vmem:[#allocation6] sm:$0xff]   ;;  %s341_s7 = sld [smem:[#allocation2 + $0x1]]  ;;  %s342_s8 = sld [smem:[#allocation2 + $0x2]]  ;;  %v437_v7 = vld [vmem:[#allocation9] sm:$0xff]  }
  0x44   :  { %381 = vmatpush3.bf16.msra.mxu0 %v429_v0  ;;  %396 = vmatprep.mubr.msk.bf16.mxu0 %vm558_vm0, %v557_v1  ;;  %v87_v6 = vld [vmem:[#allocation6 + $0x8] sm:$0xff]   ;;  %s662_s20 = sld [smem:[#allocation2 + $0x3]]  ;;  %v77_v8 = vunpack.c.l.bf16 %v76_v5  ;;  %v82_v9 = vunpack.c.h.bf16 %v76_v5  ;;  %v438_v10 = vld [vmem:[#allocation9 + $0x8] sm:$0xff]   ;;  %v433_v12 = vld [vmem:[#allocation7 + $0x20] sm:$0xff]   ;;  %s559_s24 = smov [#allocation10]  }
  0x45   :  { %382 = vmatprep.subr.bf16.mxu0 %v557_v1  ;;  %416 = vmatprep.mubr.msk.bf16.mxu1 %vm558_vm0, %v557_v1  ;;  %v88_v11 = vunpack.c.l.bf16 %v87_v6  ;;  %v439_v18 = vld [vmem:[#allocation9 + $0x10] sm:$0xff]   ;;  %v94_v21 = vunpack.c.h.bf16 %v87_v6  ;;  %v434_v22 = vld [vmem:[#allocation7 + $0x28] sm:$0xff]   ;;  %v440_v24 = vld [vmem:[#allocation9 + $0x18] sm:$0xff]   ;;  %s330_s25 = sshll.u32 %s559_s24, 4  ;;  %s331_s25 = int_to_ptr.vmem [resolvable:$true] %s330_s25 }
  0x46   :  { %401 = vmatpush3.bf16.msra.mxu1 %v437_v7  ;;  %v435_v27 = vld [vmem:[#allocation7 + $0x30] sm:$0xff]   ;;  %v441_v28 = vld [vmem:[#allocation9 + $0x20] sm:$0xff]   ;;  %v436_v30 = vld [vmem:[#allocation7 + $0x38] sm:$0xff]   ;;  %p526_p0 = scmp.lt.s32.totalorder %s331_s25, %s331_s25 }
  0x47   :  { %402 = vmatprep.subr.bf16.mxu1 %v557_v1  ;;  %v442_v31 = vld [vmem:[#allocation9 + $0x28] sm:$0xff]   ;;  %v443_v33 = vld [vmem:[#allocation9 + $0x30] sm:$0xff]   ;;  %v444_v34 = vld [vmem:[#allocation9 + $0x38] sm:$0xff]  }
  0x48   :  { %383 = vmatpush3.bf16.msra.mxu0 %v430_v2  ;;  %v78_v13 = vstv %s75_s4  ;;  %v344_v35 = vld [vmem:[%s698_s3] ss:$0 sm:$0xff]  ;;  %s521_s3 = scalar_lea.vmem %s331_s25, 128 }
  0x49   :  { %384 = vmatprep.subr.bf16.mxu0 %v557_v1  ;;  %v83_v14 = vstv %s341_s7  ;;  %v79_v15 = vmul.f32 %v78_v13, %v77_v8  ;;  %v89_v17 = vstv %s342_s8  ;;  %v353_v43 = vld [vmem:[%s700_s5] ss:$0 sm:$0xff]  ;;  %p522_p13 = scmp.ne.s32.totalorder %s331_s25, %s521_s3  ;;  %p527_p1 = scmp.lt.s32.totalorder %s521_s3, %s521_s3 }
  0x4a   :  { %v84_v16 = vmul.f32 %v83_v14, %v82_v9  ;;  %403 = vmatpush3.bf16.msra.mxu1 %v438_v10  ;;  %v90_v20 = vmul.f32 %v89_v17, %v88_v11  ;;  %v95_v23 = vstv %s662_s20 }
  0x4b   :  { %404 = vmatprep.subr.bf16.mxu1 %v557_v1  ;;  %v96_v26 = vmul.f32 %v95_v23, %v94_v21  ;;  %p528_p2 = por %p527_p1, %p526_p0 }
  0x4c   :  { %385 = vmatpush3.bf16.msra.mxu0 %v431_v3  ;;  %v85_v19 = vadd.f32 %v84_v16, %v79_v15 }
  0x4d   :  { %386 = vmatprep.subr.bf16.mxu0 %v557_v1  ;;  %p529_p3 = pnand %p528_p2, %p522_p13 }
  0x4e   :  { %405 = vmatpush3.bf16.msra.mxu1 %v439_v18  ;;  %v91_v25 = vadd.f32 %v90_v20, %v85_v19 }
  0x4f   :  { %406 = vmatprep.subr.bf16.mxu1 %v557_v1 }
  0x50   :  { %387 = vmatpush3.bf16.msra.mxu0 %v432_v4  ;;  %v97_v29 = vadd.f32 %v96_v26, %v91_v25 }
  0x51   :  { %388 = vmatprep.subr.bf16.mxu0 %v557_v1 }
  0x52   :  { %407 = vmatpush3.bf16.msra.mxu1 %v440_v24  ;;  %v98_v32 = vpack.c.bf16 %v97_v29, %v97_v29 }
  0x53   :  { %408 = vmatprep.subr.bf16.mxu1 %v557_v1 }
  0x54   :  { %389 = vmatpush3.bf16.msra.mxu0 %v433_v12 }
  0x55   :  { %390 = vmatprep.subr.bf16.mxu0 %v557_v1 }
  0x56   :  { %409 = vmatpush3.bf16.msra.mxu1 %v441_v28 }
  0x57   :  { %410 = vmatprep.subr.bf16.mxu1 %v557_v1 }
  0x58   :  { %391 = vmatpush3.bf16.msra.mxu0 %v434_v22 }
  0x59   :  { %392 = vmatprep.subr.bf16.mxu0 %v557_v1 }
  0x5a   :  { %411 = vmatpush3.bf16.msra.mxu1 %v442_v31 }
  0x5b   :  { %412 = vmatprep.subr.bf16.mxu1 %v557_v1 }
  0x5c   :  { %393 = vmatpush3.bf16.msra.mxu0 %v435_v27 }
  0x5d   :  { %394 = vmatprep.subr.bf16.mxu0 %v557_v1 }
  0x5e   :  { %413 = vmatpush3.bf16.msra.mxu1 %v443_v33 }
  0x5f   :  { %414 = vmatprep.subr.bf16.mxu1 %v557_v1 }
  0x60   :  { %395 = vmatpush3.bf16.msra.mxu0 %v436_v30 }
  0x62   :  { %415 = vmatpush3.bf16.msra.mxu1 %v444_v34 }
  0x63   :  { %397 = vmatmul.mubr.bf16.vlgmr.msra.gmra.mrb[0].mxu0 %v98_v32 }
 0x136   :  { %v204_v36 = vpop.f32.mrb[0].mxu0 }
 0x137   :  { %v205_v37 = vadd.f32 %v344_v35, %v204_v36  ;;  %v398_v38 = vpop.f32.mrb[1].mxu0 }
 0x138   :  { %v207_v39 = vpop.f32.mrb[2].mxu0 }
 0x139   :  { %v210_v40 = vmax.f32 %v205_v37, 0.0  ;;  %v399_v41 = vpop.f32.mrb[3].mxu0 }
 0x13b   :  { %v211_v42 = vpack.c.bf16 %v210_v40, %v210_v40 }
 0x13d   :  { %417 = vmatmul.mubr.bf16.vlgmr.msra.gmra.mrb[0].mxu1 %v211_v42 }
 0x210   :  { %v317_v44 = vpop.f32.mrb[0].mxu1 }
 0x211   :  { %v318_v45 = vadd.f32 %v353_v43, %v317_v44  ;;  %v418_v46 = vpop.f32.mrb[1].mxu1 }
 0x212   :  { %v320_v47 = vpop.f32.mrb[2].mxu1 }
 0x213   :  { %323 = vst [vmem:[#allocation10] sm:$0xff] %v318_v45  ;;  %v419_v48 = vpop.f32.mrb[3].mxu1 }
 0x214   :  { %532 = shalt.err (!%p529_p3)
}
 0x215   :  { %s533_s5 = scalar_lea.hbm %s701_s6, 128 }
 0x216   :  { %p534_p4 = scmp.ne.s32.totalorder %s701_s6, %s533_s5  ;;  %p537_p5 = scmp.lt.u32.totalorder %s533_s5, %s701_s6 }
 0x218   :  { %p539_p6 = pnand %p537_p5, %p534_p4 }
 0x21a   :  { %542 = shalt.err (!%p539_p6)
}
 0x21b   :  { %333 = dma.vmem_to_hbm [thread:$0]  %s331_s25, 128, %s701_s6, [#allocation4]  }
 0x21c   :  { %549 = dma.done.wait [#allocation4], 128  }
 0x21d   :  { %550 = vsyncadd [#allocation4], 4294967168 }
 0x21e   :  { %337 = vsyncpa [#allocation3], 1 }
 0x21f   :  { %338 = vsyncpa [#allocation8], 1 }
 0x220   :  { %339 = vsyncpa [#allocation4], 1 }
 0x221   :  { %340 = vsyncpa [#allocation5], 1 }

// kernel: tpu_custom_call.1
= control target key start
LH: loop header
LB: loop body
LE: loop exit
PB: predicated region body
PF: predicated region fallthrough
CT: control target
= control target key end

     0   :  { %11 = vsyncpa [#allocation5], 0  ;;  %s695_s0 = inlined_call_operand.hbm [shape: f32[4], index: 0, kind: input, shape index: {}]   ;;  %s696_s1 = inlined_call_operand.hbm [shape: bf16[8,512], index: 1, kind: input, shape index: {}]   ;;  %s697_s2 = inlined_call_operand.hbm [shape: bf16[128,128], index: 2, kind: input, shape index: {}]   ;;  %s698_s3 = inlined_call_operand.vmem [shape: f32[1,128], index: 3, kind: input, shape index: {}]   ;;  %s699_s4 = inlined_call_operand.hbm [shape: bf16[128,128], index: 4, kind: input, shape index: {}]   ;;  %s700_s5 = inlined_call_operand.vmem [shape: f32[1,128], index: 5, kind: input, shape index: {}]   ;;  %s701_s6 = inlined_call_operand.hbm [shape: f32[8,128], index: 6, kind: output, shape index: {}]  }
   0x1   :  { %12 = vsyncpa [#allocation3], 0 }
   0x2   :  { %13 = vsyncpa [#allocation8], 0 }
   0x3   :  { %14 = vsyncpa [#allocation4], 0  ;;  %s551_s21 = smov [#allocation7]   ;;  %s445_s25 = scalar_lea.hbm %s697_s2, 1024 }
   0x4   :  { %s38_s22 = sshll.u32 %s551_s21, 4  ;;  %p446_p0 = scmp.ne.s32.totalorder %s697_s2, %s445_s25  ;;  %s39_s22 = int_to_ptr.vmem [resolvable:$true] %s38_s22 }
   0x5   :  { %p449_p1 = scmp.lt.u32.totalorder %s445_s25, %s697_s2 }
   0x7   :  { %p451_p2 = pnand %p449_p1, %p446_p0 }
   0x9   :  { %454 = shalt.err (!%p451_p2)
}
   0xa   :  { %s455_s30 = scalar_lea.vmem %s39_s22, 1024  ;;  %p460_p4 = scmp.lt.s32.totalorder %s39_s22, %s39_s22 }
   0xb   :  { %p456_p3 = scmp.ne.s32.totalorder %s39_s22, %s455_s30  ;;  %p461_p5 = scmp.lt.s32.totalorder %s455_s30, %s455_s30 }
   0xd   :  { %p462_p6 = por %p461_p5, %p460_p4 }
   0xf   :  { %p463_p7 = pnand %p462_p6, %p456_p3 }
  0x11   :  { %466 = shalt.err (!%p463_p7)
}
  0x12   :  { %s552_s7 = smov 64   ;;  %s553_s8 = smov 4  }
  0x13   :  { %44 = dma.hbm_to_vmem [thread:$0]  %s697_s2, 1024, %s39_s22, [#allocation8], %s552_s7, %s552_s7, %s553_s8  }
  0x14   :  { %s467_s13 = scalar_lea.hbm %s695_s0, 16 }
  0x15   :  { %p468_p8 = scmp.ne.s32.totalorder %s695_s0, %s467_s13  ;;  %p471_p9 = scmp.lt.u32.totalorder %s467_s13, %s695_s0 }
  0x17   :  { %p473_p10 = pnand %p471_p9, %p468_p8 }
  0x19   :  { %476 = shalt.err (!%p473_p10)
}
  0x1a   :  { %s554_s18 = smov [#allocation2]   ;;  %s555_s2 = smov [#allocation6]  }
  0x1b   :  { %22 = dma.hbm_to_smem %s695_s0, 16, %s554_s18, [#allocation5]  }
  0x1c   :  { %s29_s21 = sshll.u32 %s555_s2, 4  ;;  %s556_s22 = smov [#allocation9]   ;;  %s30_s21 = int_to_ptr.vmem [resolvable:$true] %s29_s21 }
  0x1d   :  { %s52_s23 = sshll.u32 %s556_s22, 4  ;;  %s477_s26 = scalar_lea.hbm %s696_s1, 256  ;;  %s622_s23 = int_to_ptr.vmem [resolvable:$true] %s52_s23 }
  0x1e   :  { %p478_p11 = scmp.ne.s32.totalorder %s696_s1, %s477_s26  ;;  %p481_p12 = scmp.lt.u32.totalorder %s477_s26, %s696_s1 }
  0x20   :  { %p483_p13 = pnand %p481_p12, %p478_p11 }
  0x22   :  { %486 = shalt.err (!%p483_p13)
}
  0x23   :  { %s487_s0 = scalar_lea.vmem %s30_s21, 256  ;;  %p492_p1 = scmp.lt.s32.totalorder %s30_s21, %s30_s21 }
  0x24   :  { %p488_p0 = scmp.ne.s32.totalorder %s30_s21, %s487_s0  ;;  %p493_p2 = scmp.lt.s32.totalorder %s487_s0, %s487_s0 }
  0x26   :  { %p494_p3 = por %p493_p2, %p492_p1 }
  0x28   :  { %p495_p4 = pnand %p494_p3, %p488_p0 }
  0x2a   :  { %498 = shalt.err (!%p495_p4)
}
  0x2b   :  { %32 = dma.hbm_to_vmem [thread:$0]  %s696_s1, 256, %s30_s21, [#allocation3]  }
  0x2c   :  { %s499_s13 = scalar_lea.hbm %s699_s4, 1024 }
  0x2d   :  { %p500_p5 = scmp.ne.s32.totalorder %s699_s4, %s499_s13  ;;  %p503_p6 = scmp.lt.u32.totalorder %s499_s13, %s699_s4 }
  0x2f   :  { %p505_p7 = pnand %p503_p6, %p500_p5 }
  0x31   :  { %508 = shalt.err (!%p505_p7)
}
  0x32   :  { %s509_s18 = scalar_lea.vmem %s622_s23, 1024  ;;  %p514_p9 = scmp.lt.s32.totalorder %s622_s23, %s622_s23 }
  0x33   :  { %p510_p8 = scmp.ne.s32.totalorder %s622_s23, %s509_s18  ;;  %p515_p10 = scmp.lt.s32.totalorder %s509_s18, %s509_s18 }
  0x35   :  { %p516_p11 = por %p515_p10, %p514_p9 }
  0x37   :  { %p517_p12 = pnand %p516_p11, %p510_p8 }
  0x39   :  { %520 = shalt.err (!%p517_p12)
}
  0x3a   :  { %58 = dma.hbm_to_vmem [thread:$0]  %s699_s4, 1024, %s622_s23, [#allocation8], %s552_s7, %s552_s7, %s553_s8  }
  0x3b   :  { %543 = dma.done.wait [#allocation5], 16  }
  0x3c   :  { %544 = vsyncadd [#allocation5], 4294967280 }
  0x3d   :  { %545 = dma.done.wait [#allocation3], 256  }
  0x3e   :  { %546 = vsyncadd [#allocation3], 4294967040 }
  0x3f   :  { %547 = dma.done.wait [#allocation8], 2048  }
  0x40   :  { %548 = vsyncadd [#allocation8], 4294965248 }
  0x41   :  { %73 = sfence }
  0x42   :  { %v429_v0 = vld [vmem:[#allocation7] sm:$0xff]   ;;  %v557_v1 = vmov 0.0   ;;  %v430_v2 = vld [vmem:[#allocation7 + $0x8] sm:$0xff]   ;;  %vm558_vm0 = vmmov 0   ;;  %v431_v3 = vld [vmem:[#allocation7 + $0x10] sm:$0xff]   ;;  %s75_s4 = sld [smem:[#allocation2]] }
  0x43   :  { %380 = vmatprep.subr.bf16.mxu0 %v557_v1  ;;  %400 = vmatprep.subr.bf16.mxu1 %v557_v1  ;;  %v432_v4 = vld [vmem:[#allocation7 + $0x18] sm:$0xff]   ;;  %v76_v5 = vld [vmem:[#allocation6] sm:$0xff]   ;;  %s341_s7 = sld [smem:[#allocation2 + $0x1]]  ;;  %s342_s8 = sld [smem:[#allocation2 + $0x2]]  ;;  %v437_v7 = vld [vmem:[#allocation9] sm:$0xff]  }
  0x44   :  { %381 = vmatpush3.bf16.msra.mxu0 %v429_v0  ;;  %396 = vmatprep.mubr.msk.bf16.mxu0 %vm558_vm0, %v557_v1  ;;  %v87_v6 = vld [vmem:[#allocation6 + $0x8] sm:$0xff]   ;;  %s662_s20 = sld [smem:[#allocation2 + $0x3]]  ;;  %v77_v8 = vunpack.c.l.bf16 %v76_v5  ;;  %v82_v9 = vunpack.c.h.bf16 %v76_v5  ;;  %v438_v10 = vld [vmem:[#allocation9 + $0x8] sm:$0xff]   ;;  %v433_v12 = vld [vmem:[#allocation7 + $0x20] sm:$0xff]   ;;  %s559_s24 = smov [#allocation10]  }
  0x45   :  { %382 = vmatprep.subr.bf16.mxu0 %v557_v1  ;;  %416 = vmatprep.mubr.msk.bf16.mxu1 %vm558_vm0, %v557_v1  ;;  %v88_v11 = vunpack.c.l.bf16 %v87_v6  ;;  %v439_v18 = vld [vmem:[#allocation9 + $0x10] sm:$0xff]   ;;  %v94_v21 = vunpack.c.h.bf16 %v87_v6  ;;  %v434_v22 = vld [vmem:[#allocation7 + $0x28] sm:$0xff]   ;;  %v440_v24 = vld [vmem:[#allocation9 + $0x18] sm:$0xff]   ;;  %s330_s25 = sshll.u32 %s559_s24, 4  ;;  %s331_s25 = int_to_ptr.vmem [resolvable:$true] %s330_s25 }
  0x46   :  { %401 = vmatpush3.bf16.msra.mxu1 %v437_v7  ;;  %v435_v27 = vld [vmem:[#allocation7 + $0x30] sm:$0xff]   ;;  %v441_v28 = vld [vmem:[#allocation9 + $0x20] sm:$0xff]   ;;  %v436_v30 = vld [vmem:[#allocation7 + $0x38] sm:$0xff]   ;;  %p526_p0 = scmp.lt.s32.totalorder %s331_s25, %s331_s25 }
  0x47   :  { %402 = vmatprep.subr.bf16.mxu1 %v557_v1  ;;  %v442_v31 = vld [vmem:[#allocation9 + $0x28] sm:$0xff]   ;;  %v443_v33 = vld [vmem:[#allocation9 + $0x30] sm:$0xff]   ;;  %v444_v34 = vld [vmem:[#allocation9 + $0x38] sm:$0xff]  }
  0x48   :  { %383 = vmatpush3.bf16.msra.mxu0 %v430_v2  ;;  %v78_v13 = vstv %s75_s4  ;;  %v344_v35 = vld [vmem:[%s698_s3] ss:$0 sm:$0xff]  ;;  %s521_s3 = scalar_lea.vmem %s331_s25, 128 }
  0x49   :  { %384 = vmatprep.subr.bf16.mxu0 %v557_v1  ;;  %v83_v14 = vstv %s341_s7  ;;  %v79_v15 = vmul.f32 %v78_v13, %v77_v8  ;;  %v89_v17 = vstv %s342_s8  ;;  %v353_v43 = vld [vmem:[%s700_s5] ss:$0 sm:$0xff]  ;;  %p522_p13 = scmp.ne.s32.totalorder %s331_s25, %s521_s3  ;;  %p527_p1 = scmp.lt.s32.totalorder %s521_s3, %s521_s3 }
  0x4a   :  { %v84_v16 = vmul.f32 %v83_v14, %v82_v9  ;;  %403 = vmatpush3.bf16.msra.mxu1 %v438_v10  ;;  %v90_v20 = vmul.f32 %v89_v17, %v88_v11  ;;  %v95_v23 = vstv %s662_s20 }
  0x4b   :  { %404 = vmatprep.subr.bf16.mxu1 %v557_v1  ;;  %v96_v26 = vmul.f32 %v95_v23, %v94_v21  ;;  %p528_p2 = por %p527_p1, %p526_p0 }
  0x4c   :  { %385 = vmatpush3.bf16.msra.mxu0 %v431_v3  ;;  %v85_v19 = vadd.f32 %v84_v16, %v79_v15 }
  0x4d   :  { %386 = vmatprep.subr.bf16.mxu0 %v557_v1  ;;  %p529_p3 = pnand %p528_p2, %p522_p13 }
  0x4e   :  { %405 = vmatpush3.bf16.msra.mxu1 %v439_v18  ;;  %v91_v25 = vadd.f32 %v90_v20, %v85_v19 }
  0x4f   :  { %406 = vmatprep.subr.bf16.mxu1 %v557_v1 }
  0x50   :  { %387 = vmatpush3.bf16.msra.mxu0 %v432_v4  ;;  %v97_v29 = vadd.f32 %v96_v26, %v91_v25 }
  0x51   :  { %388 = vmatprep.subr.bf16.mxu0 %v557_v1 }
  0x52   :  { %407 = vmatpush3.bf16.msra.mxu1 %v440_v24  ;;  %v98_v32 = vpack.c.bf16 %v97_v29, %v97_v29 }
  0x53   :  { %408 = vmatprep.subr.bf16.mxu1 %v557_v1 }
  0x54   :  { %389 = vmatpush3.bf16.msra.mxu0 %v433_v12 }
  0x55   :  { %390 = vmatprep.subr.bf16.mxu0 %v557_v1 }
  0x56   :  { %409 = vmatpush3.bf16.msra.mxu1 %v441_v28 }
  0x57   :  { %410 = vmatprep.subr.bf16.mxu1 %v557_v1 }
  0x58   :  { %391 = vmatpush3.bf16.msra.mxu0 %v434_v22 }
  0x59   :  { %392 = vmatprep.subr.bf16.mxu0 %v557_v1 }
  0x5a   :  { %411 = vmatpush3.bf16.msra.mxu1 %v442_v31 }
  0x5b   :  { %412 = vmatprep.subr.bf16.mxu1 %v557_v1 }
  0x5c   :  { %393 = vmatpush3.bf16.msra.mxu0 %v435_v27 }
  0x5d   :  { %394 = vmatprep.subr.bf16.mxu0 %v557_v1 }
  0x5e   :  { %413 = vmatpush3.bf16.msra.mxu1 %v443_v33 }
  0x5f   :  { %414 = vmatprep.subr.bf16.mxu1 %v557_v1 }
  0x60   :  { %395 = vmatpush3.bf16.msra.mxu0 %v436_v30 }
  0x62   :  { %415 = vmatpush3.bf16.msra.mxu1 %v444_v34 }
  0x63   :  { %397 = vmatmul.mubr.bf16.vlgmr.msra.gmra.mrb[0].mxu0 %v98_v32 }
 0x136   :  { %v204_v36 = vpop.f32.mrb[0].mxu0 }
 0x137   :  { %v205_v37 = vadd.f32 %v344_v35, %v204_v36  ;;  %v398_v38 = vpop.f32.mrb[1].mxu0 }
 0x138   :  { %v207_v39 = vpop.f32.mrb[2].mxu0 }
 0x139   :  { %v210_v40 = vmax.f32 %v205_v37, 0.0  ;;  %v399_v41 = vpop.f32.mrb[3].mxu0 }
 0x13b   :  { %v211_v42 = vpack.c.bf16 %v210_v40, %v210_v40 }
 0x13d   :  { %417 = vmatmul.mubr.bf16.vlgmr.msra.gmra.mrb[0].mxu1 %v211_v42 }
 0x210   :  { %v317_v44 = vpop.f32.mrb[0].mxu1 }
 0x211   :  { %v318_v45 = vadd.f32 %v353_v43, %v317_v44  ;;  %v418_v46 = vpop.f32.mrb[1].mxu1 }
 0x212   :  { %v320_v47 = vpop.f32.mrb[2].mxu1 }
 0x213   :  { %323 = vst [vmem:[#allocation10] sm:$0xff] %v318_v45  ;;  %v419_v48 = vpop.f32.mrb[3].mxu1 }
 0x214   :  { %532 = shalt.err (!%p529_p3)
}
 0x215   :  { %s533_s5 = scalar_lea.hbm %s701_s6, 128 }
 0x216   :  { %p534_p4 = scmp.ne.s32.totalorder %s701_s6, %s533_s5  ;;  %p537_p5 = scmp.lt.u32.totalorder %s533_s5, %s701_s6 }
 0x218   :  { %p539_p6 = pnand %p537_p5, %p534_p4 }
 0x21a   :  { %542 = shalt.err (!%p539_p6)
}
 0x21b   :  { %333 = dma.vmem_to_hbm [thread:$0]  %s331_s25, 128, %s701_s6, [#allocation4]  }
 0x21c   :  { %549 = dma.done.wait [#allocation4], 128  }
 0x21d   :  { %550 = vsyncadd [#allocation4], 4294967168 }
 0x21e   :  { %337 = vsyncpa [#allocation3], 1 }
 0x21f   :  { %338 = vsyncpa [#allocation8], 1 }
 0x220   :  { %339 = vsyncpa [#allocation4], 1 }
 0x221   :  { %340 = vsyncpa [#allocation5], 1 }

</bundles_post_ra>
